<compile_context>
chip_gen: v7x
topology: tpu7x:2x2x1
jax: 0.10.0
libtpu: 0.0.40
codegen_flags: <defaults>
</compile_context>

<pallas_src>
import functools

import jax
import jax.numpy as jnp
from jax.experimental import pallas as pl
from jax.experimental.pallas import tpu as pltpu

_BLOCK_BYTES = 4 * 1024 * 1024    # target *input* bytes per grid step
_VMEM_LIMIT = 40 * 1024 * 1024    # scoped VMEM limit, safe on v5e/v6e/v7x


def _sublane_pack(dtype) -> int:
    """Sublane packing: 8 rows for 4-byte dtypes, 16 for 2-byte, 32 for 1-byte."""
    return max(8, 32 // jnp.dtype(dtype).itemsize)


def _row_tile(rows: int, row_bytes: int, pack: int, target_bytes: int) -> int:
    """Row tile ~target_bytes of input, a multiple of `pack` (or the full
    extent), and split into >= 2 blocks when rows allow (v7x megacore)."""
    tr = max(1, target_bytes // max(1, row_bytes))
    if tr >= rows:
        tr = rows
    else:
        tr = max(pack, (tr // pack) * pack)
        tr = min(tr, rows)
    if tr >= rows and rows > pack:
        # Make sure the parallel row axis has at least 2 blocks so both v7x
        # TensorCores get work (neutral on single-TC v5e/v6e).
        half = (rows + 1) // 2
        tr = min(rows, ((half + pack - 1) // pack) * pack)
    return max(1, tr)


def _merged_kernel(x_ref, o_ref, *, m: int, neg_first: bool):
    """One step writes both halves: out block is (tr, 2*m); both sub-stores
    start at lane offset 0 / m (128-aligned whenever m % 128 == 0)."""
    x = x_ref[...]
    first, second = ((-x, x) if neg_first else (x, -x))
    o_ref[:, :m] = first
    o_ref[:, m:] = second


def _packed_kernel(x_ref, o_ref, *, m: int, k: int, neg_first: bool):
    """k original rows per input row (k*m lanes); build the interleaved
    [x_r, -x_r] super-row in registers and do one lane-dense store."""
    x = x_ref[...]
    pieces = []
    for r in range(k):
        xr = x[:, r * m:(r + 1) * m]
        first, second = ((-xr, xr) if neg_first else (xr, -xr))
        pieces.append(first)
        pieces.append(second)
    o_ref[...] = jnp.concatenate(pieces, axis=-1)


def _half_kernel(x_ref, o_ref, *, neg_first: bool):
    """Column-tiled fallback: innermost grid axis selects the output half;
    the input block index does not depend on it, so the block is reused."""
    h = pl.program_id(2)
    x = x_ref[...]
    neg_half = 0 if neg_first else 1

    @pl.when(h == neg_half)
    def _():
        o_ref[...] = -x

    @pl.when(h != neg_half)
    def _():
        o_ref[...] = x


def neg_concat(x: jnp.ndarray, *, dim: int = -1, neg_first: bool = False) -> jnp.ndarray:
    """Pallas implementation of torch.cat([x, -x], dim) / torch.cat([-x, x], dim)."""
    ndim = x.ndim
    axis = dim % ndim
    shape = x.shape
    itemsize = jnp.dtype(x.dtype).itemsize
    pack = _sublane_pack(x.dtype)

    out_full_shape = shape[:axis] + (2 * shape[axis],) + shape[axis + 1:]

    rows = 1
    for s in shape[:axis]:
        rows *= s
    m = 1
    for s in shape[axis:]:
        m *= s

    x2 = x.reshape(rows, m)
    cparams1d = pltpu.CompilerParams(dimension_semantics=("parallel",),
                                     vmem_limit_bytes=_VMEM_LIMIT)

    # ---------------- Path 1: packed interleave (small M) -------------------
    # Covers the module default d=32: pack k rows per 128-lane super-row so
    # both the load and the single store are unmasked 128-multiples.
    if 8 <= m <= 64 and 64 % m == 0:
        k_sel = None
        for k in (128 // m, 64 // m):
            if k >= 1 and rows % k == 0:
                k_sel = k
                break
        if k_sel is not None:
            k = k_sel
            rows_p = rows // k
            xp = x2.reshape(rows_p, k * m)
            tr = _row_tile(rows_p, k * m * itemsize, pack, _BLOCK_BYTES)
            kernel = functools.partial(_packed_kernel, m=m, k=k,
                                       neg_first=neg_first)
            out = pl.pallas_call(
                kernel,
                out_shape=jax.ShapeDtypeStruct((rows_p, 2 * k * m), x.dtype),
                grid_spec=pltpu.PrefetchScalarGridSpec(
                    num_scalar_prefetch=0,
                    grid=(pl.cdiv(rows_p, tr),),
                    in_specs=[pl.BlockSpec((tr, k * m), lambda i: (i, 0))],
                    out_specs=pl.BlockSpec((tr, 2 * k * m), lambda i: (i, 0)),
                ),
                compiler_params=cparams1d,
            )(xp)
            return out.reshape(out_full_shape)

    fits_full_width = min(rows, pack) * m * itemsize <= 2 * _BLOCK_BYTES

    # ----- Path 3: column-tiled fallback for huge 128-aligned slabs ---------
    if (not fits_full_width) and m % 128 == 0:
        tr = min(rows, pack)
        mc = m // 128
        target_c = max(1, _BLOCK_BYTES // (tr * 128 * itemsize))
        best = 1
        d_ = 1
        while d_ * d_ <= mc:
            if mc % d_ == 0:
                for c in (d_, mc // d_):
                    if c <= target_c and c > best:
                        best = c
            d_ += 1
        tm = 128 * best
        ncols = m // tm
        kernel = functools.partial(_half_kernel, neg_first=neg_first)
        out = pl.pallas_call(
            kernel,
            out_shape=jax.ShapeDtypeStruct((rows, 2 * m), x.dtype),
            grid_spec=pltpu.PrefetchScalarGridSpec(
                num_scalar_prefetch=0,
                grid=(pl.cdiv(rows, tr), ncols, 2),
                in_specs=[pl.BlockSpec((tr, tm), lambda i, j, h: (i, j))],
                out_specs=pl.BlockSpec((tr, tm),
                                       lambda i, j, h: (i, h * ncols + j)),
            ),
            compiler_params=pltpu.CompilerParams(
                dimension_semantics=("parallel", "parallel", "arbitrary"),
                vmem_limit_bytes=_VMEM_LIMIT),
        )(x2)
        return out.reshape(out_full_shape)

    # ---------------- Path 2: merged full-width (default) -------------------
    # TODO(synk): a trailing slab that is both enormous and not 128-aligned has
    # no tiled fallback here; the full-width block may exceed the VMEM limit.
    tr = _row_tile(rows, m * itemsize, pack, _BLOCK_BYTES)
    kernel = functools.partial(_merged_kernel, m=m, neg_first=neg_first)
    out = pl.pallas_call(
        kernel,
        out_shape=jax.ShapeDtypeStruct((rows, 2 * m), x.dtype),
        grid_spec=pltpu.PrefetchScalarGridSpec(
            num_scalar_prefetch=0,
            grid=(pl.cdiv(rows, tr),),
            in_specs=[pl.BlockSpec((tr, m), lambda i: (i, 0))],
            out_specs=pl.BlockSpec((tr, 2 * m), lambda i: (i, 0)),
        ),
        compiler_params=cparams1d,
    )(x2)
    return out.reshape(out_full_shape)


if __name__ == "__main__":
    key = jax.random.PRNGKey(0)
    k1, k2, k3 = jax.random.split(key, 3)

    # Module-default config (dim=-1, neg_first=False), hidden=32:
    # packed-interleave path (4 input rows per 128-lane output super-row).
    x = jax.random.normal(k1, (2, 8, 32), dtype=jnp.float32)
    out = jax.block_until_ready(neg_concat(x, dim=-1, neg_first=False))
    ref = jnp.concatenate([x, -x], axis=-1)
    assert out.shape == (2, 8, 64)
    assert jnp.allclose(out, ref)

    # neg_first=True, 128-multiple last dim: merged path, two aligned stores.
    x128 = jax.random.normal(k2, (2, 8, 128), dtype=jnp.float32)
    out128 = jax.block_until_ready(neg_concat(x128, dim=-1, neg_first=True))
    ref128 = jnp.concatenate([-x128, x128], axis=-1)
    assert out128.shape == (2, 8, 256)
    assert jnp.allclose(out128, ref128)

    # Non-last concat dim: trailing (8, 32) slab flattened to 256 lanes,
    # merged path, no transposes.
    outd1 = jax.block_until_ready(neg_concat(x, dim=1, neg_first=False))
    refd1 = jnp.concatenate([x, -x], axis=1)
    assert outd1.shape == (2, 16, 32)
    assert jnp.allclose(outd1, refd1)

    # Odd (non power-of-two) last dim: generic merged fallback.
    x24 = jax.random.normal(k3, (4, 8, 24), dtype=jnp.float32)
    out24 = jax.block_until_ready(neg_concat(x24, dim=-1, neg_first=True))
    ref24 = jnp.concatenate([-x24, x24], axis=-1)
    assert out24.shape == (4, 8, 48)
    assert jnp.allclose(out24, ref24)

    # Concat along the leading dim.
    outd0 = jax.block_until_ready(neg_concat(x, dim=0, neg_first=False))
    refd0 = jnp.concatenate([x, -x], axis=0)
    assert outd0.shape == (4, 8, 32)
    assert jnp.allclose(outd0, refd0)

    print("KERNEL_OK")
</pallas_src>

<mosaic_0001>
module attributes {stable_mosaic.version = 11 : i64} {
  func.func @_packed_kernel(%arg0: i32, %arg1: memref<4x128xf32, #tpu.memory_space<vmem>>, %arg2: memref<4x256xf32, #tpu.memory_space<vmem>>) attributes {dimension_semantics = [#tpu.dimension_semantics<parallel>], iteration_bounds = array<i64: 1>, scalar_prefetch = 0 : i64, scratch_operands = 0 : i64, tpu.core_type = #tpu.core_type<tc>, window_params = [{transform_indices = @transform_0, window_bounds = array<i64: 4, 128>}, {transform_indices = @transform_1, window_bounds = array<i64: 4, 256>}]} {
    %c0 = arith.constant 0 : index
    %c0_0 = arith.constant 0 : index
    %0 = vector.load %arg1[%c0, %c0_0] : memref<4x128xf32, #tpu.memory_space<vmem>>, vector<4x128xf32>
    %1 = vector.extract_strided_slice %0 {offsets = [0, 0], sizes = [4, 32], strides = [1, 1]} : vector<4x128xf32> to vector<4x32xf32>
    %cst = arith.constant 0.000000e+00 : f32
    %2 = vector.broadcast %cst : f32 to vector<4x32xf32>
    %3 = arith.subf %2, %1 : vector<4x32xf32>
    %4 = vector.extract_strided_slice %0 {offsets = [0, 32], sizes = [4, 32], strides = [1, 1]} : vector<4x128xf32> to vector<4x32xf32>
    %cst_1 = arith.constant 0.000000e+00 : f32
    %5 = vector.broadcast %cst_1 : f32 to vector<4x32xf32>
    %6 = arith.subf %5, %4 : vector<4x32xf32>
    %7 = vector.extract_strided_slice %0 {offsets = [0, 64], sizes = [4, 32], strides = [1, 1]} : vector<4x128xf32> to vector<4x32xf32>
    %cst_2 = arith.constant 0.000000e+00 : f32
    %8 = vector.broadcast %cst_2 : f32 to vector<4x32xf32>
    %9 = arith.subf %8, %7 : vector<4x32xf32>
    %10 = vector.extract_strided_slice %0 {offsets = [0, 96], sizes = [4, 32], strides = [1, 1]} : vector<4x128xf32> to vector<4x32xf32>
    %cst_3 = arith.constant 0.000000e+00 : f32
    %11 = vector.broadcast %cst_3 : f32 to vector<4x32xf32>
    %12 = arith.subf %11, %10 : vector<4x32xf32>
    %13 = tpu.concatenate %1, %3, %4, %6, %7, %9, %10, %12 in 1 : vector<4x32xf32>, vector<4x32xf32>, vector<4x32xf32>, vector<4x32xf32>, vector<4x32xf32>, vector<4x32xf32>, vector<4x32xf32>, vector<4x32xf32> -> vector<4x256xf32>
    %c0_4 = arith.constant 0 : index
    %c0_5 = arith.constant 0 : index
    %14 = vector.load %arg2[%c0_4, %c0_5] : memref<4x256xf32, #tpu.memory_space<vmem>>, vector<4x256xf32>
    tpu.vector_store %arg2[%c0_4, %c0_5], %13 {strides = array<i32>} : memref<4x256xf32, #tpu.memory_space<vmem>>, vector<4x256xf32>,
    return
  }
  func.func @transform_0(%arg0: i32) -> (i32, i32) {
    %c0_i32 = arith.constant 0 : i32
    %c0_i32_0 = arith.constant 0 : i32
    return %arg0, %c0_i32 : i32, i32
  }
  func.func @transform_1(%arg0: i32) -> (i32, i32) {
    %c0_i32 = arith.constant 0 : i32
    %c0_i32_0 = arith.constant 0 : i32
    return %arg0, %c0_i32 : i32, i32
  }
}

</mosaic_0001>

<bundles_post_ra>
// kernel: tpu_custom_call.1
= control target key start
LH: loop header
LB: loop body
LE: loop exit
PB: predicated region body
PF: predicated region fallthrough
CT: control target
= control target key end

     0   :  { %6 = vsyncpa [#allocation3], 0  ;;  %s164_s0 = inlined_call_operand.hbm [shape: f32[4,128], index: 0, kind: input, shape index: {}]   ;;  %s165_s1 = inlined_call_operand.hbm [shape: f32[4,256], index: 1, kind: output, shape index: {}]  }
   0x1   :  { %7 = vsyncpa [#allocation4], 0  ;;  %s125_s6 = smov [#allocation2]   ;;  %s77_s10 = scalar_lea.hbm %s164_s0, 64 }
   0x2   :  { %s14_s7 = sshll.u32 %s125_s6, 4  ;;  %p78_p0 = scmp.ne.s32.totalorder %s164_s0, %s77_s10  ;;  %s15_s7 = int_to_ptr.vmem [resolvable:$true] %s14_s7 }
   0x3   :  { %p81_p1 = scmp.lt.u32.totalorder %s77_s10, %s164_s0 }
   0x5   :  { %p83_p2 = pnand %p81_p1, %p78_p0 }
   0x7   :  { %86 = shalt.err (!%p83_p2)
}
   0x8   :  { %s87_s15 = scalar_lea.vmem %s15_s7, 64  ;;  %p92_p4 = scmp.lt.s32.totalorder %s15_s7, %s15_s7 }
   0x9   :  { %p88_p3 = scmp.ne.s32.totalorder %s15_s7, %s87_s15  ;;  %p93_p5 = scmp.lt.s32.totalorder %s87_s15, %s87_s15 }
   0xb   :  { %p94_p6 = por %p93_p5, %p92_p4 }
   0xd   :  { %p95_p7 = pnand %p94_p6, %p88_p3 }
   0xf   :  { %98 = shalt.err (!%p95_p7)
}
  0x10   :  { %17 = dma.hbm_to_vmem [thread:$0]  %s164_s0, 64, %s15_s7, [#allocation3]  }
  0x11   :  { %121 = dma.done.wait [#allocation3], 64  }
  0x12   :  { %122 = vsyncadd [#allocation3], 4294967232  ;;  %v21_v0 = vld [vmem:[#allocation2] sm:$0xf]  ;;  %s126_s18 = smov 32   ;;  %s127_s19 = smov 64  }
  0x13   :  { %28 = vrot.lane.b32.xlu1 %v21_v0, %s126_s18  ;;  %34 = vrot.lane.b32.xlu0 %v21_v0, %s127_s19  ;;  %v22_v1 = vsub.f32 0.0, %v21_v0  ;;  %s128_s20 = smov 96   ;;  %vm43_vm0 = vcmask 261120   ;;  %vm45_vm1 = vcmask 523264   ;;  %vm47_vm2 = vcmask 785408   ;;  %s129_s0 = smov [#allocation5]  }
  0x14   :  { %s63_s21 = sshll.u32 %s129_s0, 4  ;;  %s64_s21 = int_to_ptr.vmem [resolvable:$true] %s63_s21 }
  0x15   :  { %s99_s22 = scalar_lea.vmem %s64_s21, 128  ;;  %p104_p9 = scmp.lt.s32.totalorder %s64_s21, %s64_s21 }
  0x16   :  { %p100_p8 = scmp.ne.s32.totalorder %s64_s21, %s99_s22  ;;  %p105_p10 = scmp.lt.s32.totalorder %s99_s22, %s99_s22 }
  0x17   :  { %37 = vrot.lane.b32.xlu1 %v22_v1, %s128_s20  ;;  %24 = vrot.lane.b32.xlu0 %v22_v1, %s126_s18 }
  0x18   :  { %p106_p11 = por %p105_p10, %p104_p9 }
  0x1a   :  { %p107_p12 = pnand %p106_p11, %p100_p8 }
  0x1b   :  { %31 = vrot.lane.b32.xlu1 %v22_v1, %s127_s19  ;;  %40 = vrot.lane.b32.xlu0 %v21_v0, %s128_s20 }
  0x85   :  { %v29_v2 = vpop.permute.xlu1 %28  ;;  %v35_v3 = vpop.permute.xlu0 %34 }
  0x89   :  { %v38_v4 = vpop.permute.xlu1 %37  ;;  %v25_v5 = vpop.permute.xlu0 %24 }
  0x8a   :  { %v44_v6 = vsel %vm43_vm0, %v21_v0, %v25_v5  ;;  %v49_v7 = vsel %vm43_vm0, %v35_v3, %v38_v4 }
  0x8b   :  { %v46_v9 = vsel %vm45_vm1, %v44_v6, %v29_v2 }
  0x8d   :  { %v32_v8 = vpop.permute.xlu1 %31  ;;  %v41_v10 = vpop.permute.xlu0 %40 }
  0x8e   :  { %v48_v11 = vsel %vm47_vm2, %v46_v9, %v32_v8  ;;  %v50_v12 = vsel %vm45_vm1, %v49_v7, %v41_v10 }
  0x8f   :  { %v51_v13 = vsel %vm47_vm2, %v50_v12, %v22_v1 }
  0x90   :  { %v54_v14 = vcombine.low %v48_v11, %v51_v13 }
  0x92   :  { %56 = vst [vmem:[#allocation5] sm:$0xff] %v54_v14 }
  0x93   :  { %110 = shalt.err (!%p107_p12)
}
  0x94   :  { %s111_s25 = scalar_lea.hbm %s165_s1, 128 }
  0x95   :  { %p112_p13 = scmp.ne.s32.totalorder %s165_s1, %s111_s25  ;;  %p115_p0 = scmp.lt.u32.totalorder %s111_s25, %s165_s1 }
  0x97   :  { %p117_p1 = pnand %p115_p0, %p112_p13 }
  0x99   :  { %120 = shalt.err (!%p117_p1)
}
  0x9a   :  { %66 = dma.vmem_to_hbm [thread:$0]  %s64_s21, 128, %s165_s1, [#allocation4]  }
  0x9b   :  { %123 = dma.done.wait [#allocation4], 128  }
  0x9c   :  { %124 = vsyncadd [#allocation4], 4294967168 }
  0x9d   :  { %70 = vsyncpa [#allocation3], 1 }
  0x9e   :  { %71 = vsyncpa [#allocation4], 1 }

</bundles_post_ra>
